<compile_context>
chip_gen: v5e
topology: v5e:2x2
jax: 0.10.0
libtpu: 0.0.40
codegen_flags: <defaults>
</compile_context>

<pallas_src>
import functools
import math

import numpy as np
import jax
import jax.numpy as jnp
from jax.experimental import pallas as pl
from jax.experimental.pallas import tpu as pltpu

EPS = 1e-5
F32 = jnp.float32

_VMEM = pl.BlockSpec(memory_space=pltpu.MemorySpace.VMEM)


# ------------------------------- the kernel ---------------------------------
def _unet_kernel(x_ref, colid_ref, w_ref, b_ref, o_ref, *,
                 wmeta, bmeta, N, P, Lin, roll_sign, use_bf16):
    NP = N * P
    mdt = jnp.bfloat16 if use_bf16 else F32
    col = colid_ref[...]                      # (1, NP): index within sample blk

    # ---- slab accessors (static, 8-aligned row offsets) ---------------------
    def W(name):
        o, r, c = wmeta[name]
        return w_ref[o:o + r, 0:c]

    def B(name):
        o, r, _ = bmeta[name]
        return b_ref[o:o + r, 0:1]

    # ---- shared helpers ------------------------------------------------------
    def mask(v, L):
        """Zero columns whose in-sample index is >= L (keeps sample tails 0)."""
        if L >= P:
            return v
        return jnp.where(col < float(L), v, 0.0)

    def shift_read(x, s):
        """y[:, j] = x[:, (j + s) mod NP]; wrapped columns only ever feed
        masked output slots or read zeroed sample tails (P is sized for it)."""
        if s % NP == 0:
            return x
        return pltpu.roll(x, (-(s * roll_sign)) % NP, 1)   # XLU lane rotation

    def matmul(w, v):
        return jnp.dot(w.astype(mdt), v.astype(mdt), preferred_element_type=F32)

    def conv(x, wname, bname, shifts):
        """im2col 1-D conv: K lane-rolled copies -> ONE MXU matmul."""
        blocks = [shift_read(x, s) for s in shifts]
        patches = blocks[0] if len(blocks) == 1 else jnp.concatenate(blocks, 0)
        return matmul(W(wname), patches) + B(bname)

    def bn(x, gname, bname, L):
        """BatchNorm1d training-mode biased batch stats over the N*L valid
        columns; two-pass with masked deviations (review numeric concern)."""
        count = N * L
        mean = jnp.sum(x, axis=1, keepdims=True) * (1.0 / count)
        d = jnp.where(col < float(L), x - mean, 0.0)
        var = jnp.sum(d * d, axis=1, keepdims=True) * (1.0 / count)
        inv = jax.lax.rsqrt(var + EPS)
        return (x - mean) * (inv * B(gname)) + B(bname)

    def sigmoid(v):                           # EUP tanh path, exact identity
        return 0.5 * jnp.tanh(0.5 * v) + 0.5

    def glu(h, wname, bname):
        """Fused value/gate 1x1 conv: ONE matmul, 8-aligned sublane split."""
        o, rows, C = wmeta[wname]
        y = matmul(w_ref[o:o + rows, 0:C], h) + B(bname)
        Cp = rows - C                         # gate half starts 8-aligned
        return y[0:C, :] * sigmoid(y[Cp:Cp + C, :])

    def encoder(tag, h, L):
        k = wmeta[f"{tag}.wc"][2] // h.shape[0]
        hb = bn(h, f"{tag}.g", f"{tag}.b", L)
        y = jnp.maximum(conv(hb, f"{tag}.wc", f"{tag}.bc", list(range(k))), 0.0)
        Lout = L - k + 1
        return mask(glu(y, f"{tag}.wglu", f"{tag}.bglu"), Lout), Lout

    def decoder(tag, h, L):
        k = wmeta[f"{tag}.wt"][2] // h.shape[0]
        hb = bn(h, f"{tag}.g", f"{tag}.b", L)
        z = mask(glu(hb, f"{tag}.wglu", f"{tag}.bglu"), L)
        y = jnp.maximum(conv(z, f"{tag}.wt", f"{tag}.bt",
                             [-t for t in range(k)]), 0.0)  # ConvTranspose1d
        Lout = L + k - 1
        return mask(y, Lout), Lout

    # ---- the whole network, resident in VMEM / vregs -------------------------
    x = x_ref[...]
    x1, L1 = encoder("enc1", x, Lin)
    x2, L2 = encoder("enc2", x1, L1)
    x3, L3 = encoder("enc3", x2, L2)

    kb = wmeta["bott.w"][2] // x3.shape[0]
    bott = mask(conv(x3, "bott.w", "bott.b",
                     [t - kb // 2 for t in range(kb)]), L3)  # 'same' conv

    x5, L5 = decoder("dec1", jnp.concatenate([x3, bott], 0), L3)
    x7, L7 = decoder("dec2", jnp.concatenate([x2, x5], 0), L5)
    x9, L9 = decoder("dec3", jnp.concatenate([x1, x7], 0), L7)

    ko = wmeta["out.w1"][2] // x9.shape[0]
    y = conv(x9, "out.w1", "out.b1", [t - ko // 2 for t in range(ko)])
    out = matmul(W("out.w2"), y) + B("out.b2")
    o_ref[...] = mask(out, L9)                # single full store, masked tail


# --------------------------- parameter packing ------------------------------
def _round_up(v, m):
    return -(-v // m) * m


def _pack_slab(entries, min_width, align):
    """Row-stack 2-D blocks into one (rows, width) f32 slab.  Every block's row
    offset is 8-aligned so in-kernel slices never straddle a sublane tile."""
    meta, rows, max_c = {}, 0, 1
    for name, a in entries:
        r, c = a.shape
        meta[name] = (rows, r, c)
        rows += _round_up(r, 8)
        max_c = max(max_c, c)
    rows = max(rows, 8)
    width = _round_up(max(max_c, min_width), align)
    slab = np.zeros((rows, width), np.float32)
    for name, a in entries:
        o, r, c = meta[name]
        slab[o:o + r, :c] = a
    return jnp.asarray(slab), meta


def pack_params(params):
    """torch-layout params -> (weight slab, bias slab, metas, static config)."""
    p = jax.tree_util.tree_map(lambda a: np.asarray(a, np.float32), params)
    ew, eb = [], []
    cfg = {"enc_k": [], "dec_k": []}

    def flat_conv(w):        # (Cout, Cin, K) -> (Cout, K*Cin), tap-major cols
        co, ci, k = w.shape
        return np.transpose(w, (0, 2, 1)).reshape(co, k * ci)

    def flat_convT(w):       # (Cin, Cout, K) -> (Cout, K*Cin), tap-major cols
        ci, co, k = w.shape
        return np.transpose(w, (1, 2, 0)).reshape(co, k * ci)

    def pad_glu(w, b):       # stack value/gate halves with the gate 8-aligned
        C = w.shape[0] // 2
        Cp = _round_up(C, 8)
        wp = np.zeros((Cp + C, w.shape[1]), np.float32)
        bp = np.zeros((Cp + C,), np.float32)
        wp[:C], wp[Cp:Cp + C] = w[:C], w[C:]
        bp[:C], bp[Cp:Cp + C] = b[:C], b[C:]
        return wp, bp

    def add_w(name, a):
        ew.append((name, a))

    def add_b(name, a):
        eb.append((name, a.reshape(-1, 1)))

    for i in (1, 2, 3):
        q = p[f"enc{i}"]
        cfg["enc_k"].append(int(q["wc"].shape[2]))
        add_b(f"enc{i}.g", q["g"]); add_b(f"enc{i}.b", q["beta"])
        add_w(f"enc{i}.wc", flat_conv(q["wc"])); add_b(f"enc{i}.bc", q["bc"])
        wg, bg = pad_glu(q["wglu"], q["bglu"])
        add_w(f"enc{i}.wglu", wg); add_b(f"enc{i}.bglu", bg)
    cfg["bott_k"] = int(p["bott"]["w"].shape[2])
    add_w("bott.w", flat_conv(p["bott"]["w"])); add_b("bott.b", p["bott"]["b"])
    for i in (1, 2, 3):
        q = p[f"dec{i}"]
        cfg["dec_k"].append(int(q["wt"].shape[2]))
        add_b(f"dec{i}.g", q["g"]); add_b(f"dec{i}.b", q["beta"])
        wg, bg = pad_glu(q["wglu"], q["bglu"])
        add_w(f"dec{i}.wglu", wg); add_b(f"dec{i}.bglu", bg)
        add_w(f"dec{i}.wt", flat_convT(q["wt"])); add_b(f"dec{i}.bt", q["bt"])
    cfg["out_k"] = int(p["out"]["w1"].shape[2])
    add_w("out.w1", flat_conv(p["out"]["w1"])); add_b("out.b1", p["out"]["b1"])
    add_w("out.w2", p["out"]["w2"][:, :, 0]);   add_b("out.b2", p["out"]["b2"])
    cfg["in_channels"] = int(p["enc1"]["wc"].shape[1])
    cfg["out_channels"] = int(p["out"]["w2"].shape[0])

    w_slab, wmeta = _pack_slab(ew, min_width=128, align=128)
    b_slab, bmeta = _pack_slab(eb, min_width=8, align=8)
    return w_slab, b_slab, wmeta, bmeta, cfg


# ------------------------------ forward wrapper ------------------------------
def detect_roll_convention():
    """Probe pltpu.roll once: +1 if it matches np.roll (positive shift moves
    data to higher indices), -1 otherwise.  Removes any sign-convention risk."""
    def k(x_ref, o_ref):
        o_ref[...] = pltpu.roll(x_ref[...], 1, 1)

    x = jnp.arange(128, dtype=F32).reshape(1, 128)
    y = pl.pallas_call(k, out_shape=jax.ShapeDtypeStruct((1, 128), F32),
                       in_specs=[_VMEM], out_specs=_VMEM)(x)
    v = float(y[0, 1])
    if v == 0.0:
        return 1
    if v == 2.0:
        return -1
    raise RuntimeError(f"unexpected pltpu.roll probe value: {v}")


def make_forward(wmeta, bmeta, cfg, roll_sign, use_bf16=False):
    """Build a jitted forward(w_slab, b_slab, x) for a fixed packed model."""

    @jax.jit
    def forward(w_slab, b_slab, x):
        x = x.astype(F32)
        N, Cin, Lin = x.shape
        assert Cin == cfg["in_channels"]

        # ---- static length plan + per-sample lane-block sizing --------------
        # p_min guarantees every 'same'/transposed-conv shift stays inside a
        # sample's zero tail (review correctness concern: static check).
        L = Lin
        p_min = Lin
        for k in cfg["enc_k"]:
            L -= k - 1
        assert L >= 1, "input too short for the encoder stack"
        p_min = max(p_min, L + cfg["bott_k"] // 2)
        for k in cfg["dec_k"]:
            L += k - 1
            p_min = max(p_min, L)
        L_out = L
        p_min = max(p_min, L_out + cfg["out_k"] // 2)
        P = p_min
        while (N * P) % 128:              # lane-dense packed activation width
            P += 1
        assert P >= p_min
        NP = N * P
        # TODO(synk): on v6e/v7x fold more samples to reach >=256 lanes when
        # the deployment batch allows (2x256^2 MXU column occupancy).

        # ---- lane-pack the batch: sample n owns columns [n*P, (n+1)*P) ------
        xp = jnp.pad(x, ((0, 0), (0, 0), (0, P - Lin)))
        x2d = jnp.transpose(xp, (1, 0, 2)).reshape(Cin, NP)
        colid = jnp.tile(jnp.arange(P, dtype=F32), (N,)).reshape(1, NP)

        c_out = cfg["out_channels"]
        kernel = functools.partial(
            _unet_kernel, wmeta=wmeta, bmeta=bmeta, N=N, P=P, Lin=Lin,
            roll_sign=roll_sign, use_bf16=use_bf16)
        out2d = pl.pallas_call(
            kernel,
            out_shape=jax.ShapeDtypeStruct((c_out, NP), F32),
            in_specs=[_VMEM, _VMEM, _VMEM, _VMEM],
            out_specs=_VMEM,
            compiler_params=pltpu.CompilerParams(
                # whole net + slabs << 1 MiB here; re-derive before scaling
                # Lin/batch (v7x has only 64 MiB physical VMEM).
                vmem_limit_bytes=32 * 1024 * 1024,
            ),
        )(x2d, colid, w_slab, b_slab)

        out = out2d.reshape(c_out, N, P)[:, :, :L_out]
        return jnp.transpose(out, (1, 0, 2))  # (N, Cout, L_out)

    return forward


def _prefers_bf16():
    """bf16 matmul operands only on chips with a natively-bf16 MXU + bf16 VPU
    (v6e / v7x); keep f32 on v5e and older (review guidance)."""
    try:
        kind = jax.devices()[0].device_kind.lower()
    except Exception:
        return False
    return ("v6" in kind) or ("v7" in kind)


# --------------------------- parameter construction -------------------------
def init_params(key, in_channels=1, out_channels=1, depth=4, kernel_size=5):
    c = in_channels
    enc_dims = [(c, depth * c), (depth * c, 2 * depth * c),
                (2 * depth * c, 4 * depth * c)]
    dec_dims = [(8 * depth * c, 2 * depth * c), (4 * depth * c, depth * c),
                (2 * depth * c, 2 * c)]
    cb, co2 = 4 * depth * c, 2 * c
    keys = jax.random.split(key, 8)

    def _n(k, shape, scale):
        return scale * jax.random.normal(k, shape, F32)

    def enc_init(k, cin, cout, ks):
        k1, k2, k3, k4, k5, k6 = jax.random.split(k, 6)
        sc, s1 = 1.0 / math.sqrt(cin * ks), 1.0 / math.sqrt(cout)
        return dict(g=1.0 + 0.1 * jax.random.normal(k5, (cin,), F32),
                    beta=0.1 * jax.random.normal(k6, (cin,), F32),
                    wc=_n(k1, (cout, cin, ks), sc), bc=_n(k2, (cout,), sc),
                    wglu=_n(k3, (2 * cout, cout), s1),
                    bglu=_n(k4, (2 * cout,), s1))

    def dec_init(k, cin, cout, ks):
        k1, k2, k3, k4, k5, k6 = jax.random.split(k, 6)
        s1, st = 1.0 / math.sqrt(cin), 1.0 / math.sqrt(cin * ks)
        return dict(g=1.0 + 0.1 * jax.random.normal(k5, (cin,), F32),
                    beta=0.1 * jax.random.normal(k6, (cin,), F32),
                    wglu=_n(k1, (2 * cin, cin), s1), bglu=_n(k2, (2 * cin,), s1),
                    wt=_n(k3, (cin, cout, ks), st), bt=_n(k4, (cout,), st))

    kb1, kb2 = jax.random.split(keys[3], 2)
    ko = jax.random.split(keys[7], 4)
    sb = 1.0 / math.sqrt(cb * 7)
    so1, so2 = 1.0 / math.sqrt(co2 * 3), 1.0 / math.sqrt(co2)
    return {
        "enc1": enc_init(keys[0], *enc_dims[0], kernel_size),
        "enc2": enc_init(keys[1], *enc_dims[1], kernel_size),
        "enc3": enc_init(keys[2], *enc_dims[2], kernel_size),
        "bott": dict(w=_n(kb1, (cb, cb, 7), sb), b=_n(kb2, (cb,), sb)),
        "dec1": dec_init(keys[4], *dec_dims[0], kernel_size),
        "dec2": dec_init(keys[5], *dec_dims[1], kernel_size),
        "dec3": dec_init(keys[6], *dec_dims[2], kernel_size),
        "out": dict(w1=_n(ko[0], (co2, co2, 3), so1), b1=_n(ko[1], (co2,), so1),
                    w2=_n(ko[2], (out_channels, co2, 1), so2),
                    b2=_n(ko[3], (out_channels,), so2)),
    }


# ------------------------- pure-JAX reference (spec) -------------------------
def reference_forward(params, x):
    """Plain-XLA reference of SmallCleanUNet.forward (train-mode BatchNorm)."""
    prec = jax.lax.Precision.HIGHEST
    x = x.astype(F32)

    def conv1d(h, w, b, pad):
        y = jax.lax.conv_general_dilated(
            h, w, (1,), [(pad, pad)],
            dimension_numbers=("NCH", "OIH", "NCH"), precision=prec)
        return y + b[None, :, None]

    def convT1d(h, w, b):
        k = w.shape[2]
        wf = jnp.flip(jnp.transpose(w, (1, 0, 2)), axis=2)
        y = jax.lax.conv_general_dilated(
            h, wf, (1,), [(k - 1, k - 1)],
            dimension_numbers=("NCH", "OIH", "NCH"), precision=prec)
        return y + b[None, :, None]

    def bn(h, g, b):
        m = jnp.mean(h, axis=(0, 2), keepdims=True)
        v = jnp.mean((h - m) ** 2, axis=(0, 2), keepdims=True)
        return (h - m) * jax.lax.rsqrt(v + EPS) * g[None, :, None] + b[None, :, None]

    def pw(h, w, b):                       # 1x1 Conv2d == pointwise matmul
        return jnp.einsum("oc,ncl->nol", w, h, precision=prec) + b[None, :, None]

    def glu(h):
        c = h.shape[1] // 2
        return h[:, :c] * jax.nn.sigmoid(h[:, c:])

    def enc(q, h):
        h = bn(h, q["g"], q["beta"])
        h = jax.nn.relu(conv1d(h, q["wc"], q["bc"], 0))
        return glu(pw(h, q["wglu"], q["bglu"]))

    def dec(q, h):
        h = bn(h, q["g"], q["beta"])
        h = glu(pw(h, q["wglu"], q["bglu"]))
        return jax.nn.relu(convT1d(h, q["wt"], q["bt"]))

    x1 = enc(params["enc1"], x)
    x2 = enc(params["enc2"], x1)
    x3 = enc(params["enc3"], x2)
    b = conv1d(x3, params["bott"]["w"], params["bott"]["b"],
               params["bott"]["w"].shape[2] // 2)
    x5 = dec(params["dec1"], jnp.concatenate([x3, b], axis=1))
    x7 = dec(params["dec2"], jnp.concatenate([x2, x5], axis=1))
    x9 = dec(params["dec3"], jnp.concatenate([x1, x7], axis=1))
    y = conv1d(x9, params["out"]["w1"], params["out"]["b1"],
               params["out"]["w1"].shape[2] // 2)
    return conv1d(y, params["out"]["w2"], params["out"]["b2"], 0)


# ----------------------------------- main -----------------------------------
if __name__ == "__main__":
    root = jax.random.PRNGKey(0)
    k_x, k_p = jax.random.split(root)

    # PyTorch input layout is (N, C, L); SmallCleanUNet defaults: in_channels=1.
    x = jax.random.normal(k_x, (2, 1, 32), F32)
    params = init_params(k_p)
    w_slab, b_slab, wmeta, bmeta, cfg = pack_params(params)
    roll_sign = detect_roll_convention()

    # f32 kernel + tight check against the pure-JAX reference.
    fwd = make_forward(wmeta, bmeta, cfg, roll_sign, use_bf16=False)
    out = fwd(w_slab, b_slab, x)
    jax.block_until_ready(out)

    ref = jax.jit(reference_forward)(params, x)
    jax.block_until_ready(ref)

    assert out.shape == ref.shape == (2, 1, 32), (out.shape, ref.shape)
    assert bool(jnp.all(jnp.isfinite(out)))
    err = float(jnp.max(jnp.abs(out - ref)))
    scale = float(jnp.max(jnp.abs(ref)))
    assert err <= 5e-3 * max(1.0, scale), (err, scale)

    # Optional bf16-operand variant (f32 accumulation) on v6e / v7x only.
    if _prefers_bf16():
        out_bf = make_forward(wmeta, bmeta, cfg, roll_sign,
                              use_bf16=True)(w_slab, b_slab, x)
        jax.block_until_ready(out_bf)
        assert out_bf.shape == out.shape
        assert bool(jnp.all(jnp.isfinite(out_bf)))

    print("KERNEL_OK")
</pallas_src>

<mosaic_0001>
module attributes {stable_mosaic.version = 11 : i64} {
  func.func @k(%arg0: memref<1x128xf32, #tpu.memory_space<vmem>>, %arg1: memref<1x128xf32, #tpu.memory_space<vmem>>) attributes {dimension_semantics = [], scalar_prefetch = 0 : i64, scratch_operands = 0 : i64, tpu.core_type = #tpu.core_type<tc>} {
    %c0 = arith.constant 0 : index
    %c0_0 = arith.constant 0 : index
    %0 = vector.load %arg0[%c0, %c0_0] : memref<1x128xf32, #tpu.memory_space<vmem>>, vector<1x128xf32>
    %c1_i32 = arith.constant 1 : i32
    %1 = tpu.dynamic_rotate %0 by %c1_i32 dim 1 : vector<1x128xf32>, i32 -> vector<1x128xf32>
    %c0_1 = arith.constant 0 : index
    %c0_2 = arith.constant 0 : index
    %2 = vector.load %arg1[%c0_1, %c0_2] : memref<1x128xf32, #tpu.memory_space<vmem>>, vector<1x128xf32>
    tpu.vector_store %arg1[%c0_1, %c0_2], %1 {strides = array<i32>} : memref<1x128xf32, #tpu.memory_space<vmem>>, vector<1x128xf32>,
    return
  }
}

</mosaic_0001>

<bundles_post_ra>
// kernel: tpu_custom_call.1
= control target key start
LH: loop header
LB: loop body
LE: loop exit
PB: predicated region body
PF: predicated region fallthrough
CT: control target
= control target key end

     0   :  { %6 = vsyncpa [#allocation3], 0  ;;  %s118_s0 = inlined_call_operand.hbm [shape: f32[1,128], index: 0, kind: input, shape index: {}]   ;;  %s119_s1 = inlined_call_operand.hbm [shape: f32[1,128], index: 1, kind: output, shape index: {}]  }
   0x1   :  { %7 = vsyncpa [#allocation4], 0  ;;  %s13_s8 = sshll.u32 %s118_s0, 4  ;;  %s99_s9 = smov [#allocation2]   ;;  %s14_s8 = int_to_ptr.hbm [resolvable:$true] %s13_s8 }
   0x2   :  { %s15_s10 = sshll.u32 %s99_s9, 4  ;;  %s16_s10 = int_to_ptr.vmem [resolvable:$true] %s15_s10 }
   0x3   :  { %18 = dma.hbm_to_vmem [thread:$0]  %s14_s8, 16, %s16_s10, [#allocation3]  }
   0x4   :  { %95 = dma.done.wait [#allocation3], 16  }
   0x5   :  { %96 = vsyncadd [#allocation3], 4294967280  ;;  %v23_v0 = vld [vmem:[#allocation2] sm:$0x1]  ;;  %s100_s11 = smov 1   ;;  %s101_s12 = smov [#allocation5]  }
   0x6   :  { %24 = vrot.lane.b32.xlu0 %v23_v0, %s100_s11  ;;  %s32_s13 = sshll.u32 %s101_s12, 4  ;;  %s34_s16 = sshll.u32 %s119_s1, 4  ;;  %s33_s13 = int_to_ptr.vmem [resolvable:$true] %s32_s13  ;;  %s35_s16 = int_to_ptr.hbm [resolvable:$true] %s34_s16 }
  0x78   :  { %v25_v1 = vpop.permute.xlu0 %24 }
  0x79   :  { %26 = vst [vmem:[#allocation5] sm:$0x1] %v25_v1 }
  0x7a   :  { %37 = dma.vmem_to_hbm [thread:$0]  %s33_s13, 16, %s35_s16, [#allocation4]  }
  0x7b   :  { %97 = dma.done.wait [#allocation4], 16  }
  0x7c   :  { %98 = vsyncadd [#allocation4], 4294967280 }
  0x7d   :  { %42 = vsyncpa [#allocation3], 1 }
  0x7e   :  { %43 = vsyncpa [#allocation4], 1 }

</bundles_post_ra>
